<compile_context>
chip_gen: v6e
topology: v6e:2x2x1
jax: 0.10.0
libtpu: 0.0.40
codegen_flags: <defaults>
</compile_context>

<pallas_src>
import functools

import jax
import jax.numpy as jnp
from jax.experimental import pallas as pl
from jax.experimental.pallas import tpu as pltpu

# Packed-parameter row layout (lane width = 4H):
#   row 0      : W_ih^T as a (1, 4H) row (I == 1)
#   row 1      : b_ih + b_hh             (1, 4H)
#   row 2      : W_linear row, lanes [0:H), rest zero
#   row 3      : b_linear at lane 0
#   rows 4..7  : zero padding (keeps W_hh^T sublane-tile aligned)
#   rows 8..8+H: W_hh^T                  (H, 4H)
_WHH_ROW0 = 8


def lstm_batched_kernel(x_ref, packed_ref, out_ref):
    # x_ref:      (Bb, T)     per-timestep scalar inputs for this batch block
    # packed_ref: (8+H, 4H)   packed parameters (layout above), f32
    # out_ref:    (Bb, 1)     predictions = Linear(h_T)
    Bb, T = x_ref.shape
    four_h = packed_ref.shape[1]
    H = four_h // 4

    wih = packed_ref[0:1, :]                       # (1, 4H)
    bias = packed_ref[1:2, :]                      # (1, 4H)  b_ih + b_hh
    wlin = packed_ref[2:3, 0:H]                    # (1, H)
    blin = packed_ref[3:4, 0:1]                    # (1, 1)
    # One-time cast of the recurrent weights to bf16 (outside the loop).
    w_hh_t = packed_ref[_WHH_ROW0:_WHH_ROW0 + H, :].astype(jnp.bfloat16)  # (H,4H)

    # Zero initial state, as hard-coded by the PyTorch module's hidden_cell.
    h = jnp.zeros((Bb, H), jnp.float32)
    c = jnp.zeros((Bb, H), jnp.float32)

    # Fully unrolled recurrence: T is static & tiny, so the scheduler sees every
    # step; one bf16 MXU matmul (Bb x H @ H x 4H) per step on the serial chain.
    for t in range(T):
        x_t = x_ref[:, t:t + 1]                    # (Bb, 1), independent of h
        gates = (x_t * wih + bias
                 + jnp.dot(h.astype(jnp.bfloat16), w_hh_t,
                           preferred_element_type=jnp.float32))   # (Bb, 4H)
        # Two full-width EUP ops over the whole 128-lane gate vector, then
        # slice; gate order follows PyTorch nn.LSTM: [i, f, g, o].
        sig = jax.nn.sigmoid(gates)
        th = jnp.tanh(gates)
        i_g = sig[:, 0 * H:1 * H]
        f_g = sig[:, 1 * H:2 * H]
        g_g = th[:, 2 * H:3 * H]
        o_g = sig[:, 3 * H:4 * H]
        c = f_g * c + i_g * g_g
        h = o_g * jnp.tanh(c)

    # Epilogue Linear(H, 1) on the VPU + XLU (no MXU round-trip on the tail).
    out_ref[...] = jnp.sum(h * wlin, axis=-1, keepdims=True) + blin


def prepare_params(params):
    """One-time packing of the PyTorch-style parameters into a single buffer."""
    H = params["w_hh"].shape[1]
    O = params["w_lin"].shape[0]
    assert O == 1, "VPU epilogue assumes output_size == 1 (the module default)"
    four_h = 4 * H
    packed = jnp.zeros((_WHH_ROW0 + H, four_h), jnp.float32)
    packed = packed.at[0, :].set(params["w_ih"].reshape(four_h))       # (4H,1)->row
    packed = packed.at[1, :].set(params["b_ih"] + params["b_hh"])
    packed = packed.at[2, :H].set(params["w_lin"].reshape(H))
    packed = packed.at[3, 0].set(params["b_lin"][0])
    packed = packed.at[_WHH_ROW0:_WHH_ROW0 + H, :].set(params["w_hh"].T)
    return packed


@functools.partial(jax.jit, static_argnames=("block_b",))
def lstm_model_forward(x, packed, block_b=8):
    """x: (B, T, I) float32 (batch_first).  Returns (B, 1)."""
    B, T, I = x.shape
    assert I == 1, "module is built for input_size == 1"
    assert block_b % 8 == 0
    four_h = packed.shape[1]
    H = four_h // 4
    O = 1

    # Free reshape (I == 1); pad the batch up to a multiple of the block size.
    x2 = x.reshape(B, T)
    Bp = ((B + block_b - 1) // block_b) * block_b
    if Bp != B:
        x2 = jnp.pad(x2, ((0, Bp - B), (0, 0)))
    grid = (Bp // block_b,)

    flops = Bp * T * (2 * H * four_h + 3 * four_h) + Bp * 2 * H
    transcendentals = Bp * T * (2 * four_h + H)
    bytes_accessed = 4 * (Bp * T + packed.shape[0] * four_h + Bp * O)

    out = pl.pallas_call(
        lstm_batched_kernel,
        out_shape=jax.ShapeDtypeStruct((Bp, O), jnp.float32),
        grid_spec=pltpu.PrefetchScalarGridSpec(
            num_scalar_prefetch=0,
            grid=grid,
            in_specs=[
                pl.BlockSpec((block_b, T), lambda i: (i, 0)),
                # Constant block index across the grid -> fetched once.
                pl.BlockSpec(packed.shape, lambda i: (0, 0)),
            ],
            out_specs=pl.BlockSpec((block_b, O), lambda i: (i, 0)),
        ),
        compiler_params=pltpu.CompilerParams(
            dimension_semantics=("parallel",)),   # v7x: shard batch over 2 TCs
        cost_estimate=pl.CostEstimate(flops=flops,
                                      transcendentals=transcendentals,
                                      bytes_accessed=bytes_accessed),
    )(x2, packed)
    return out[:B]


def lstm_model_reference(x, params):
    """Pure-JAX f32 reference reproducing PyTorch nn.LSTM + Linear forward."""
    B, T, I = x.shape
    H = params["w_hh"].shape[1]
    h = jnp.zeros((B, H), jnp.float32)
    c = jnp.zeros((B, H), jnp.float32)
    for t in range(T):
        x_t = x[:, t, :]
        gates = (x_t @ params["w_ih"].T + params["b_ih"]
                 + h @ params["w_hh"].T + params["b_hh"])
        i_g = jax.nn.sigmoid(gates[:, 0 * H:1 * H])
        f_g = jax.nn.sigmoid(gates[:, 1 * H:2 * H])
        g_g = jnp.tanh(gates[:, 2 * H:3 * H])
        o_g = jax.nn.sigmoid(gates[:, 3 * H:4 * H])
        c = f_g * c + i_g * g_g
        h = o_g * jnp.tanh(c)
    return h @ params["w_lin"].T + params["b_lin"]


def init_params(key, input_size, hidden_size, output_size):
    """Deterministic init mirroring PyTorch's uniform(-1/sqrt(H), 1/sqrt(H))."""
    k = 1.0 / jnp.sqrt(jnp.float32(hidden_size))
    ks = jax.random.split(key, 6)
    u = lambda kk, shape: jax.random.uniform(kk, shape, jnp.float32, -k, k)
    return {
        "w_ih": u(ks[0], (4 * hidden_size, input_size)),
        "w_hh": u(ks[1], (4 * hidden_size, hidden_size)),
        "b_ih": u(ks[2], (4 * hidden_size,)),
        "b_hh": u(ks[3], (4 * hidden_size,)),
        "w_lin": u(ks[4], (output_size, hidden_size)),
        "b_lin": u(ks[5], (output_size,)),
    }


if __name__ == "__main__":
    # Small shapes consistent with the module: input_size=1, output_size=1,
    # H=32 so 4H == 128 (one lane width), T == 8 (one sublane extent).
    # Batch of 16 sequences, processed 8-per-block -> grid=(2,), marked
    # "parallel" so v7x can split the two blocks across its TensorCores.
    B, T, I, H, O = 16, 8, 1, 32, 1

    key = jax.random.PRNGKey(0)
    k_params, k_x = jax.random.split(key)
    params = init_params(k_params, I, H, O)
    x = jax.random.normal(k_x, (B, T, I), dtype=jnp.float32)

    packed = prepare_params(params)   # one-time layout prep, outside per-call path
    out = jax.block_until_ready(lstm_model_forward(x, packed, block_b=8))
    ref = jax.block_until_ready(lstm_model_reference(x, params))

    assert out.shape == (B, O), out.shape
    # bf16 recurrent-matmul inputs => compare against the f32 reference with a
    # correspondingly relaxed tolerance.
    assert jnp.allclose(out, ref, atol=1e-2, rtol=1e-2), (out, ref)
    print("KERNEL_OK")
</pallas_src>

<mosaic_0001>
module attributes {stable_mosaic.version = 11 : i64} {
  func.func @lstm_batched_kernel(%arg0: i32, %arg1: memref<8x8xf32, #tpu.memory_space<vmem>>, %arg2: memref<40x128xf32, #tpu.memory_space<vmem>>, %arg3: memref<8x1xf32, #tpu.memory_space<vmem>>) attributes {dimension_semantics = [#tpu.dimension_semantics<parallel>], iteration_bounds = array<i64: 2>, scalar_prefetch = 0 : i64, scratch_operands = 0 : i64, tpu.core_type = #tpu.core_type<tc>, window_params = [{transform_indices = @transform_0, window_bounds = array<i64: 8, 8>}, {pipeline_mode = #tpu.pipeline_mode<synchronous>, transform_indices = @transform_1, window_bounds = array<i64: 40, 128>}, {transform_indices = @transform_2, window_bounds = array<i64: 8, 1>}]} {
    %c0 = arith.constant 0 : index
    %c0_0 = arith.constant 0 : index
    %0 = vector.load %arg2[%c0, %c0_0] : memref<40x128xf32, #tpu.memory_space<vmem>>, vector<1x128xf32>
    %c1 = arith.constant 1 : index
    %c0_1 = arith.constant 0 : index
    %1 = vector.load %arg2[%c1, %c0_1] : memref<40x128xf32, #tpu.memory_space<vmem>>, vector<1x128xf32>
    %c2 = arith.constant 2 : index
    %c0_2 = arith.constant 0 : index
    %2 = vector.load %arg2[%c2, %c0_2] : memref<40x128xf32, #tpu.memory_space<vmem>>, vector<1x32xf32>
    %c3 = arith.constant 3 : index
    %c0_3 = arith.constant 0 : index
    %3 = vector.load %arg2[%c3, %c0_3] : memref<40x128xf32, #tpu.memory_space<vmem>>, vector<1x1xf32>
    %c8 = arith.constant 8 : index
    %c0_4 = arith.constant 0 : index
    %4 = vector.load %arg2[%c8, %c0_4] : memref<40x128xf32, #tpu.memory_space<vmem>>, vector<32x128xf32>
    %5 = arith.truncf %4 : vector<32x128xf32> to vector<32x128xbf16>
    %cst = arith.constant 0.000000e+00 : f32
    %6 = vector.broadcast %cst : f32 to vector<8x32xf32>
    %cst_5 = arith.constant 0.000000e+00 : f32
    %7 = vector.broadcast %cst_5 : f32 to vector<8x32xf32>
    %c0_6 = arith.constant 0 : index
    %c0_7 = arith.constant 0 : index
    %8 = vector.load %arg1[%c0_6, %c0_7] : memref<8x8xf32, #tpu.memory_space<vmem>>, vector<8x1xf32>
    %9 = vector.broadcast %8 : vector<8x1xf32> to vector<8x128xf32>
    %10 = vector.broadcast %0 : vector<1x128xf32> to vector<8x128xf32>
    %11 = arith.mulf %9, %10 : vector<8x128xf32>
    %12 = vector.broadcast %1 : vector<1x128xf32> to vector<8x128xf32>
    %13 = arith.addf %11, %12 : vector<8x128xf32>
    %14 = arith.truncf %6 : vector<8x32xf32> to vector<8x32xbf16>
    %cst_8 = arith.constant dense<0.000000e+00> : vector<8x128xf32>
    %15 = tpu.matmul %14, %5, %cst_8 {dimension_numbers = #tpu.dot_dimension_numbers<[1], [0], [0], [1], [0, 0, 1, 1], [], []>} : vector<8x32xbf16>, vector<32x128xbf16>, vector<8x128xf32> -> vector<8x128xf32>
    %16 = arith.addf %13, %15 : vector<8x128xf32>
    %17 = arith.negf %16 : vector<8x128xf32>
    %18 = math.exp %17 : vector<8x128xf32>
    %cst_9 = arith.constant 1.000000e+00 : f32
    %19 = vector.broadcast %cst_9 : f32 to vector<8x128xf32>
    %20 = arith.addf %19, %18 : vector<8x128xf32>
    %21 = arith.divf %19, %20 : vector<8x128xf32>
    %22 = math.tanh %16 : vector<8x128xf32>
    %23 = vector.extract_strided_slice %21 {offsets = [0, 0], sizes = [8, 32], strides = [1, 1]} : vector<8x128xf32> to vector<8x32xf32>
    %24 = vector.extract_strided_slice %21 {offsets = [0, 32], sizes = [8, 32], strides = [1, 1]} : vector<8x128xf32> to vector<8x32xf32>
    %25 = vector.extract_strided_slice %22 {offsets = [0, 64], sizes = [8, 32], strides = [1, 1]} : vector<8x128xf32> to vector<8x32xf32>
    %26 = vector.extract_strided_slice %21 {offsets = [0, 96], sizes = [8, 32], strides = [1, 1]} : vector<8x128xf32> to vector<8x32xf32>
    %27 = arith.mulf %24, %7 : vector<8x32xf32>
    %28 = arith.mulf %23, %25 : vector<8x32xf32>
    %29 = arith.addf %27, %28 : vector<8x32xf32>
    %30 = math.tanh %29 : vector<8x32xf32>
    %31 = arith.mulf %26, %30 : vector<8x32xf32>
    %c0_10 = arith.constant 0 : index
    %c1_11 = arith.constant 1 : index
    %32 = vector.load %arg1[%c0_10, %c1_11] : memref<8x8xf32, #tpu.memory_space<vmem>>, vector<8x1xf32>
    %33 = vector.broadcast %32 : vector<8x1xf32> to vector<8x128xf32>
    %34 = vector.broadcast %0 : vector<1x128xf32> to vector<8x128xf32>
    %35 = arith.mulf %33, %34 : vector<8x128xf32>
    %36 = vector.broadcast %1 : vector<1x128xf32> to vector<8x128xf32>
    %37 = arith.addf %35, %36 : vector<8x128xf32>
    %38 = arith.truncf %31 : vector<8x32xf32> to vector<8x32xbf16>
    %cst_12 = arith.constant dense<0.000000e+00> : vector<8x128xf32>
    %39 = tpu.matmul %38, %5, %cst_12 {dimension_numbers = #tpu.dot_dimension_numbers<[1], [0], [0], [1], [0, 0, 1, 1], [], []>} : vector<8x32xbf16>, vector<32x128xbf16>, vector<8x128xf32> -> vector<8x128xf32>
    %40 = arith.addf %37, %39 : vector<8x128xf32>
    %41 = arith.negf %40 : vector<8x128xf32>
    %42 = math.exp %41 : vector<8x128xf32>
    %cst_13 = arith.constant 1.000000e+00 : f32
    %43 = vector.broadcast %cst_13 : f32 to vector<8x128xf32>
    %44 = arith.addf %43, %42 : vector<8x128xf32>
    %45 = arith.divf %43, %44 : vector<8x128xf32>
    %46 = math.tanh %40 : vector<8x128xf32>
    %47 = vector.extract_strided_slice %45 {offsets = [0, 0], sizes = [8, 32], strides = [1, 1]} : vector<8x128xf32> to vector<8x32xf32>
    %48 = vector.extract_strided_slice %45 {offsets = [0, 32], sizes = [8, 32], strides = [1, 1]} : vector<8x128xf32> to vector<8x32xf32>
    %49 = vector.extract_strided_slice %46 {offsets = [0, 64], sizes = [8, 32], strides = [1, 1]} : vector<8x128xf32> to vector<8x32xf32>
    %50 = vector.extract_strided_slice %45 {offsets = [0, 96], sizes = [8, 32], strides = [1, 1]} : vector<8x128xf32> to vector<8x32xf32>
    %51 = arith.mulf %48, %29 : vector<8x32xf32>
    %52 = arith.mulf %47, %49 : vector<8x32xf32>
    %53 = arith.addf %51, %52 : vector<8x32xf32>
    %54 = math.tanh %53 : vector<8x32xf32>
    %55 = arith.mulf %50, %54 : vector<8x32xf32>
    %c0_14 = arith.constant 0 : index
    %c2_15 = arith.constant 2 : index
    %56 = vector.load %arg1[%c0_14, %c2_15] : memref<8x8xf32, #tpu.memory_space<vmem>>, vector<8x1xf32>
    %57 = vector.broadcast %56 : vector<8x1xf32> to vector<8x128xf32>
    %58 = vector.broadcast %0 : vector<1x128xf32> to vector<8x128xf32>
    %59 = arith.mulf %57, %58 : vector<8x128xf32>
    %60 = vector.broadcast %1 : vector<1x128xf32> to vector<8x128xf32>
    %61 = arith.addf %59, %60 : vector<8x128xf32>
    %62 = arith.truncf %55 : vector<8x32xf32> to vector<8x32xbf16>
    %cst_16 = arith.constant dense<0.000000e+00> : vector<8x128xf32>
    %63 = tpu.matmul %62, %5, %cst_16 {dimension_numbers = #tpu.dot_dimension_numbers<[1], [0], [0], [1], [0, 0, 1, 1], [], []>} : vector<8x32xbf16>, vector<32x128xbf16>, vector<8x128xf32> -> vector<8x128xf32>
    %64 = arith.addf %61, %63 : vector<8x128xf32>
    %65 = arith.negf %64 : vector<8x128xf32>
    %66 = math.exp %65 : vector<8x128xf32>
    %cst_17 = arith.constant 1.000000e+00 : f32
    %67 = vector.broadcast %cst_17 : f32 to vector<8x128xf32>
    %68 = arith.addf %67, %66 : vector<8x128xf32>
    %69 = arith.divf %67, %68 : vector<8x128xf32>
    %70 = math.tanh %64 : vector<8x128xf32>
    %71 = vector.extract_strided_slice %69 {offsets = [0, 0], sizes = [8, 32], strides = [1, 1]} : vector<8x128xf32> to vector<8x32xf32>
    %72 = vector.extract_strided_slice %69 {offsets = [0, 32], sizes = [8, 32], strides = [1, 1]} : vector<8x128xf32> to vector<8x32xf32>
    %73 = vector.extract_strided_slice %70 {offsets = [0, 64], sizes = [8, 32], strides = [1, 1]} : vector<8x128xf32> to vector<8x32xf32>
    %74 = vector.extract_strided_slice %69 {offsets = [0, 96], sizes = [8, 32], strides = [1, 1]} : vector<8x128xf32> to vector<8x32xf32>
    %75 = arith.mulf %72, %53 : vector<8x32xf32>
    %76 = arith.mulf %71, %73 : vector<8x32xf32>
    %77 = arith.addf %75, %76 : vector<8x32xf32>
    %78 = math.tanh %77 : vector<8x32xf32>
    %79 = arith.mulf %74, %78 : vector<8x32xf32>
    %c0_18 = arith.constant 0 : index
    %c3_19 = arith.constant 3 : index
    %80 = vector.load %arg1[%c0_18, %c3_19] : memref<8x8xf32, #tpu.memory_space<vmem>>, vector<8x1xf32>
    %81 = vector.broadcast %80 : vector<8x1xf32> to vector<8x128xf32>
    %82 = vector.broadcast %0 : vector<1x128xf32> to vector<8x128xf32>
    %83 = arith.mulf %81, %82 : vector<8x128xf32>
    %84 = vector.broadcast %1 : vector<1x128xf32> to vector<8x128xf32>
    %85 = arith.addf %83, %84 : vector<8x128xf32>
    %86 = arith.truncf %79 : vector<8x32xf32> to vector<8x32xbf16>
    %cst_20 = arith.constant dense<0.000000e+00> : vector<8x128xf32>
    %87 = tpu.matmul %86, %5, %cst_20 {dimension_numbers = #tpu.dot_dimension_numbers<[1], [0], [0], [1], [0, 0, 1, 1], [], []>} : vector<8x32xbf16>, vector<32x128xbf16>, vector<8x128xf32> -> vector<8x128xf32>
    %88 = arith.addf %85, %87 : vector<8x128xf32>
    %89 = arith.negf %88 : vector<8x128xf32>
    %90 = math.exp %89 : vector<8x128xf32>
    %cst_21 = arith.constant 1.000000e+00 : f32
    %91 = vector.broadcast %cst_21 : f32 to vector<8x128xf32>
    %92 = arith.addf %91, %90 : vector<8x128xf32>
    %93 = arith.divf %91, %92 : vector<8x128xf32>
    %94 = math.tanh %88 : vector<8x128xf32>
    %95 = vector.extract_strided_slice %93 {offsets = [0, 0], sizes = [8, 32], strides = [1, 1]} : vector<8x128xf32> to vector<8x32xf32>
    %96 = vector.extract_strided_slice %93 {offsets = [0, 32], sizes = [8, 32], strides = [1, 1]} : vector<8x128xf32> to vector<8x32xf32>
    %97 = vector.extract_strided_slice %94 {offsets = [0, 64], sizes = [8, 32], strides = [1, 1]} : vector<8x128xf32> to vector<8x32xf32>
    %98 = vector.extract_strided_slice %93 {offsets = [0, 96], sizes = [8, 32], strides = [1, 1]} : vector<8x128xf32> to vector<8x32xf32>
    %99 = arith.mulf %96, %77 : vector<8x32xf32>
    %100 = arith.mulf %95, %97 : vector<8x32xf32>
    %101 = arith.addf %99, %100 : vector<8x32xf32>
    %102 = math.tanh %101 : vector<8x32xf32>
    %103 = arith.mulf %98, %102 : vector<8x32xf32>
    %c0_22 = arith.constant 0 : index
    %c4 = arith.constant 4 : index
    %104 = vector.load %arg1[%c0_22, %c4] : memref<8x8xf32, #tpu.memory_space<vmem>>, vector<8x1xf32>
    %105 = vector.broadcast %104 : vector<8x1xf32> to vector<8x128xf32>
    %106 = vector.broadcast %0 : vector<1x128xf32> to vector<8x128xf32>
    %107 = arith.mulf %105, %106 : vector<8x128xf32>
    %108 = vector.broadcast %1 : vector<1x128xf32> to vector<8x128xf32>
    %109 = arith.addf %107, %108 : vector<8x128xf32>
    %110 = arith.truncf %103 : vector<8x32xf32> to vector<8x32xbf16>
    %cst_23 = arith.constant dense<0.000000e+00> : vector<8x128xf32>
    %111 = tpu.matmul %110, %5, %cst_23 {dimension_numbers = #tpu.dot_dimension_numbers<[1], [0], [0], [1], [0, 0, 1, 1], [], []>} : vector<8x32xbf16>, vector<32x128xbf16>, vector<8x128xf32> -> vector<8x128xf32>
    %112 = arith.addf %109, %111 : vector<8x128xf32>
    %113 = arith.negf %112 : vector<8x128xf32>
    %114 = math.exp %113 : vector<8x128xf32>
    %cst_24 = arith.constant 1.000000e+00 : f32
    %115 = vector.broadcast %cst_24 : f32 to vector<8x128xf32>
    %116 = arith.addf %115, %114 : vector<8x128xf32>
    %117 = arith.divf %115, %116 : vector<8x128xf32>
    %118 = math.tanh %112 : vector<8x128xf32>
    %119 = vector.extract_strided_slice %117 {offsets = [0, 0], sizes = [8, 32], strides = [1, 1]} : vector<8x128xf32> to vector<8x32xf32>
    %120 = vector.extract_strided_slice %117 {offsets = [0, 32], sizes = [8, 32], strides = [1, 1]} : vector<8x128xf32> to vector<8x32xf32>
    %121 = vector.extract_strided_slice %118 {offsets = [0, 64], sizes = [8, 32], strides = [1, 1]} : vector<8x128xf32> to vector<8x32xf32>
    %122 = vector.extract_strided_slice %117 {offsets = [0, 96], sizes = [8, 32], strides = [1, 1]} : vector<8x128xf32> to vector<8x32xf32>
    %123 = arith.mulf %120, %101 : vector<8x32xf32>
    %124 = arith.mulf %119, %121 : vector<8x32xf32>
    %125 = arith.addf %123, %124 : vector<8x32xf32>
    %126 = math.tanh %125 : vector<8x32xf32>
    %127 = arith.mulf %122, %126 : vector<8x32xf32>
    %c0_25 = arith.constant 0 : index
    %c5 = arith.constant 5 : index
    %128 = vector.load %arg1[%c0_25, %c5] : memref<8x8xf32, #tpu.memory_space<vmem>>, vector<8x1xf32>
    %129 = vector.broadcast %128 : vector<8x1xf32> to vector<8x128xf32>
    %130 = vector.broadcast %0 : vector<1x128xf32> to vector<8x128xf32>
    %131 = arith.mulf %129, %130 : vector<8x128xf32>
    %132 = vector.broadcast %1 : vector<1x128xf32> to vector<8x128xf32>
    %133 = arith.addf %131, %132 : vector<8x128xf32>
    %134 = arith.truncf %127 : vector<8x32xf32> to vector<8x32xbf16>
    %cst_26 = arith.constant dense<0.000000e+00> : vector<8x128xf32>
    %135 = tpu.matmul %134, %5, %cst_26 {dimension_numbers = #tpu.dot_dimension_numbers<[1], [0], [0], [1], [0, 0, 1, 1], [], []>} : vector<8x32xbf16>, vector<32x128xbf16>, vector<8x128xf32> -> vector<8x128xf32>
    %136 = arith.addf %133, %135 : vector<8x128xf32>
    %137 = arith.negf %136 : vector<8x128xf32>
    %138 = math.exp %137 : vector<8x128xf32>
    %cst_27 = arith.constant 1.000000e+00 : f32
    %139 = vector.broadcast %cst_27 : f32 to vector<8x128xf32>
    %140 = arith.addf %139, %138 : vector<8x128xf32>
    %141 = arith.divf %139, %140 : vector<8x128xf32>
    %142 = math.tanh %136 : vector<8x128xf32>
    %143 = vector.extract_strided_slice %141 {offsets = [0, 0], sizes = [8, 32], strides = [1, 1]} : vector<8x128xf32> to vector<8x32xf32>
    %144 = vector.extract_strided_slice %141 {offsets = [0, 32], sizes = [8, 32], strides = [1, 1]} : vector<8x128xf32> to vector<8x32xf32>
    %145 = vector.extract_strided_slice %142 {offsets = [0, 64], sizes = [8, 32], strides = [1, 1]} : vector<8x128xf32> to vector<8x32xf32>
    %146 = vector.extract_strided_slice %141 {offsets = [0, 96], sizes = [8, 32], strides = [1, 1]} : vector<8x128xf32> to vector<8x32xf32>
    %147 = arith.mulf %144, %125 : vector<8x32xf32>
    %148 = arith.mulf %143, %145 : vector<8x32xf32>
    %149 = arith.addf %147, %148 : vector<8x32xf32>
    %150 = math.tanh %149 : vector<8x32xf32>
    %151 = arith.mulf %146, %150 : vector<8x32xf32>
    %c0_28 = arith.constant 0 : index
    %c6 = arith.constant 6 : index
    %152 = vector.load %arg1[%c0_28, %c6] : memref<8x8xf32, #tpu.memory_space<vmem>>, vector<8x1xf32>
    %153 = vector.broadcast %152 : vector<8x1xf32> to vector<8x128xf32>
    %154 = vector.broadcast %0 : vector<1x128xf32> to vector<8x128xf32>
    %155 = arith.mulf %153, %154 : vector<8x128xf32>
    %156 = vector.broadcast %1 : vector<1x128xf32> to vector<8x128xf32>
    %157 = arith.addf %155, %156 : vector<8x128xf32>
    %158 = arith.truncf %151 : vector<8x32xf32> to vector<8x32xbf16>
    %cst_29 = arith.constant dense<0.000000e+00> : vector<8x128xf32>
    %159 = tpu.matmul %158, %5, %cst_29 {dimension_numbers = #tpu.dot_dimension_numbers<[1], [0], [0], [1], [0, 0, 1, 1], [], []>} : vector<8x32xbf16>, vector<32x128xbf16>, vector<8x128xf32> -> vector<8x128xf32>
    %160 = arith.addf %157, %159 : vector<8x128xf32>
    %161 = arith.negf %160 : vector<8x128xf32>
    %162 = math.exp %161 : vector<8x128xf32>
    %cst_30 = arith.constant 1.000000e+00 : f32
    %163 = vector.broadcast %cst_30 : f32 to vector<8x128xf32>
    %164 = arith.addf %163, %162 : vector<8x128xf32>
    %165 = arith.divf %163, %164 : vector<8x128xf32>
    %166 = math.tanh %160 : vector<8x128xf32>
    %167 = vector.extract_strided_slice %165 {offsets = [0, 0], sizes = [8, 32], strides = [1, 1]} : vector<8x128xf32> to vector<8x32xf32>
    %168 = vector.extract_strided_slice %165 {offsets = [0, 32], sizes = [8, 32], strides = [1, 1]} : vector<8x128xf32> to vector<8x32xf32>
    %169 = vector.extract_strided_slice %166 {offsets = [0, 64], sizes = [8, 32], strides = [1, 1]} : vector<8x128xf32> to vector<8x32xf32>
    %170 = vector.extract_strided_slice %165 {offsets = [0, 96], sizes = [8, 32], strides = [1, 1]} : vector<8x128xf32> to vector<8x32xf32>
    %171 = arith.mulf %168, %149 : vector<8x32xf32>
    %172 = arith.mulf %167, %169 : vector<8x32xf32>
    %173 = arith.addf %171, %172 : vector<8x32xf32>
    %174 = math.tanh %173 : vector<8x32xf32>
    %175 = arith.mulf %170, %174 : vector<8x32xf32>
    %c0_31 = arith.constant 0 : index
    %c7 = arith.constant 7 : index
    %176 = vector.load %arg1[%c0_31, %c7] : memref<8x8xf32, #tpu.memory_space<vmem>>, vector<8x1xf32>
    %177 = vector.broadcast %176 : vector<8x1xf32> to vector<8x128xf32>
    %178 = vector.broadcast %0 : vector<1x128xf32> to vector<8x128xf32>
    %179 = arith.mulf %177, %178 : vector<8x128xf32>
    %180 = vector.broadcast %1 : vector<1x128xf32> to vector<8x128xf32>
    %181 = arith.addf %179, %180 : vector<8x128xf32>
    %182 = arith.truncf %175 : vector<8x32xf32> to vector<8x32xbf16>
    %cst_32 = arith.constant dense<0.000000e+00> : vector<8x128xf32>
    %183 = tpu.matmul %182, %5, %cst_32 {dimension_numbers = #tpu.dot_dimension_numbers<[1], [0], [0], [1], [0, 0, 1, 1], [], []>} : vector<8x32xbf16>, vector<32x128xbf16>, vector<8x128xf32> -> vector<8x128xf32>
    %184 = arith.addf %181, %183 : vector<8x128xf32>
    %185 = arith.negf %184 : vector<8x128xf32>
    %186 = math.exp %185 : vector<8x128xf32>
    %cst_33 = arith.constant 1.000000e+00 : f32
    %187 = vector.broadcast %cst_33 : f32 to vector<8x128xf32>
    %188 = arith.addf %187, %186 : vector<8x128xf32>
    %189 = arith.divf %187, %188 : vector<8x128xf32>
    %190 = math.tanh %184 : vector<8x128xf32>
    %191 = vector.extract_strided_slice %189 {offsets = [0, 0], sizes = [8, 32], strides = [1, 1]} : vector<8x128xf32> to vector<8x32xf32>
    %192 = vector.extract_strided_slice %189 {offsets = [0, 32], sizes = [8, 32], strides = [1, 1]} : vector<8x128xf32> to vector<8x32xf32>
    %193 = vector.extract_strided_slice %190 {offsets = [0, 64], sizes = [8, 32], strides = [1, 1]} : vector<8x128xf32> to vector<8x32xf32>
    %194 = vector.extract_strided_slice %189 {offsets = [0, 96], sizes = [8, 32], strides = [1, 1]} : vector<8x128xf32> to vector<8x32xf32>
    %195 = arith.mulf %192, %173 : vector<8x32xf32>
    %196 = arith.mulf %191, %193 : vector<8x32xf32>
    %197 = arith.addf %195, %196 : vector<8x32xf32>
    %198 = math.tanh %197 : vector<8x32xf32>
    %199 = arith.mulf %194, %198 : vector<8x32xf32>
    %200 = vector.broadcast %2 : vector<1x32xf32> to vector<8x32xf32>
    %201 = arith.mulf %199, %200 : vector<8x32xf32>
    %cst_34 = arith.constant dense<0.000000e+00> : vector<8xf32>
    %202 = vector.multi_reduction <add>, %201, %cst_34 [1] : vector<8x32xf32> to vector<8xf32>
    %203 = vector.shape_cast %202 : vector<8xf32> to vector<8x1xf32>
    %204 = vector.broadcast %3 : vector<1x1xf32> to vector<8x1xf32>
    %205 = arith.addf %203, %204 : vector<8x1xf32>
    %c0_35 = arith.constant 0 : index
    %c0_36 = arith.constant 0 : index
    %206 = vector.load %arg3[%c0_35, %c0_36] : memref<8x1xf32, #tpu.memory_space<vmem>>, vector<8x1xf32>
    tpu.vector_store %arg3[%c0_35, %c0_36], %205 {strides = array<i32>} : memref<8x1xf32, #tpu.memory_space<vmem>>, vector<8x1xf32>,
    return
  }
  func.func @transform_0(%arg0: i32) -> (i32, i32) {
    %c0_i32 = arith.constant 0 : i32
    %c0_i32_0 = arith.constant 0 : i32
    return %arg0, %c0_i32 : i32, i32
  }
  func.func @transform_1(%arg0: i32) -> (i32, i32) {
    %c0_i32 = arith.constant 0 : i32
    %c0_i32_0 = arith.constant 0 : i32
    %c0_i32_1 = arith.constant 0 : i32
    return %c0_i32, %c0_i32_0 : i32, i32
  }
  func.func @transform_2(%arg0: i32) -> (i32, i32) {
    %c0_i32 = arith.constant 0 : i32
    %c0_i32_0 = arith.constant 0 : i32
    return %arg0, %c0_i32 : i32, i32
  }
}

</mosaic_0001>

<bundles_post_ra>
// kernel: lstm_model_forward.1
= control target key start
LH: loop header
LB: loop body
LE: loop exit
PB: predicated region body
PF: predicated region fallthrough
CT: control target
= control target key end

     0   :  { %7 = vsyncpa [#allocation3], 0  ;;  %s1177_s9 = smov 0   ;;  %s1345_s0 = inlined_call_operand.vmem [shape: f32[16,8], index: 0, kind: input, shape index: {}]   ;;  %s1346_s1 = inlined_call_operand.hbm [shape: f32[40,128], index: 1, kind: input, shape index: {}]   ;;  %s1347_s2 = inlined_call_operand.vmem [shape: f32[16,1], index: 2, kind: output, shape index: {}]  }
   0x1 LB: > { %s1183_s10 = sadd.s32 4294967295, %s1144_s9   ;;  %p886_p0 = scmp.ge.s32.totalorder %s1144_s9, 1  ;;  %s1144_s9 = sphi %s1177_s9, %s13_s9  }
   0x2   : > { %p91_p1 = scmp.lt.s32.totalorder %s1144_s9, 3  ;;  %s1146_s11 = smov [#allocation2]  }
   0x3   : > { %s103_s12 = sshll.u32 %s1146_s11, 4  ;;  %p1010_p3 = scmp.eq.s32.totalorder %s1183_s10, 0  ;;  %s104_s12 = int_to_ptr.vmem [resolvable:$true] %s103_s12 }
   0x4   : > { %p1187_p2 = pnand %p886_p0, %p91_p1  ;;  %s1119_s14 = scalar_lea.vmem %s104_s12, 640 }
   0x5   : > { %p1120_p7 = scmp.ne.s32.totalorder %s104_s12, %s1119_s14  ;;  %p1127_p10 = scmp.lt.s32.totalorder %s104_s12, %s104_s12 }
   0x6   : > { %p1006_p4 = pneg %p1187_p2  ;;  %p1128_p11 = scmp.lt.s32.totalorder %s1119_s14, %s1119_s14 }
   0x8   : > { %p1007_p5 = pnand %p1010_p3, %p1006_p4  ;;  %p1129_p12 = por %p1128_p11, %p1127_p10 }
   0xa   : > { %p1110_p6 = pneg %p1007_p5 }
   0xc   : > { %p1122_p8 = pnand %p1120_p7, %p1110_p6 }
   0xe   : > { %p1123_p9 = pneg %p1122_p8 }
  0x10   : > { %p1130_p13 = pnand %p1129_p12, %p1123_p9 }
  0x12   : > { %1133 = shalt.err (!%p1130_p13)
}
  0x13   : > { %s1147_s15 = smov 128   ;;  %s1148_s16 = smov 8  }
  0x14   : > { %1009 = dma.hbm_to_vmem [thread:$0]  (!%p1007_p5), %s1346_s1, 640, %s104_s12, [#allocation3], %s1147_s15, %s1147_s15, %s1148_s16  }
  0x15   : > { %126 = sbr.rel (%p1187_p2) target bundleno = 5708 (0x164c), region = 28 }
  0x1a   : > { %1139 = dma.done.wait (%p1010_p3), [#allocation3], 640  }
  0x1b   : > { %1141 = vsyncadd (%p1010_p3), [#allocation3], 4294966656  ;;  %p146_p0 = scmp.lt.s32.totalorder %s1183_s10, 1  ;;  %v1149_v0 = vmov 0.0   ;;  %vm1150_vm0 = vmmov 0   ;;  %v1151_v1 = vmov 0  }
  0x1c   : > { %938 = vmatprep.subr.bf16.mxu0 %v1149_v0  ;;  %942 = vmatprep.mubr.msk.bf16.mxu0 %vm1150_vm0, %v1149_v0  ;;  %v161_v2 = vld [vmem:[#allocation2 + $0x18] sm:$0xff]  ;;  %v162_v3 = vld [vmem:[#allocation2 + $0x20] sm:$0xff]  ;;  %v159_v4 = vld [vmem:[#allocation2 + $0x8] sm:$0xff]  ;;  %s1152_s23 = smov 64   ;;  %s1153_s24 = smov 32   ;;  %v1154_v30 = vmov 1  }
  0x1d   : > { %1036 = vset.pattern.permute.xlu0 %v1151_v1  ;;  %s1350_s10 = smov (!%p146_p0, %s1183_s10), 1  ;;  %946 = vmatprep.subr.bf16.mxu1 %v1149_v0  ;;  %v1221_v5 = vpack.c.bf16 %v162_v3, %v161_v2  ;;  %v160_v6 = vld [vmem:[#allocation2 + $0x10] sm:$0xff]  ;;  %v1242_v10 = vld [vmem:[#allocation2] ss:$0 sm:$0xff]  ;;  %v1245_v12 = vld [vmem:[#allocation2 + $0x1] ss:$0 sm:$0xff] }
  0x1e   : > { %950 = vmatprep.mubr.msk.bf16.mxu1 %vm1150_vm0, %v1149_v0  ;;  %s891_s19 = sshll.u32 %s1350_s10, 3  ;;  %v1227_v8 = vpack.c.bf16 %v160_v6, %v159_v4  ;;  %1037 = vset.pattern.permute.xlu1 %v1154_v30  ;;  %vm181_vm1 = vcmask 261120   ;;  %v1155_v54 = vmov 2   ;;  %s1161_s25 = smov 96   ;;  %vm817_vm2 = vcmask 7168  }
  0x1f   : > { %s149_s22 = scalar_lea.vmem %s1345_s0, %s891_s19  ;;  %939 = vmatpush3.bf16.msra.mxu0 %v1221_v5  ;;  %947 = vmatpush3.bf16.msra.mxu1 %v1221_v5  ;;  %s153_s28 = scalar_lea.vmem %s1347_s2, %s891_s19 }
  0x20   : > { %v1223_v7 = vld [vmem:[%s149_s22] sm:$0xff]  ;;  %940 = vmatprep.subr.bf16.mxu0 %v1149_v0  ;;  %948 = vmatprep.subr.bf16.mxu1 %v1149_v0 }
  0x21   : > { %168 = vperm.xlu0 %1036, %v1223_v7  }
  0x23   : > { %941 = vmatpush3.bf16.msra.mxu0 %v1227_v8  ;;  %949 = vmatpush3.bf16.msra.mxu1 %v1227_v8 }
  0x24   : > { %954 = vmatprep.subr.bf16.mxu0 %v1149_v0  ;;  %962 = vmatprep.subr.bf16.mxu1 %v1149_v0 }
  0x25   : > { %1038 = vset.pattern.permute.xlu0 %v1155_v54 }
  0x26   : > { %943 = vmatmul.mubr.bf16.vlgmr.msra.gmra.mxu0 %v1151_v1 }
  0x27   : > { %955 = vmatpush3.bf16.msra.mxu0 %v1221_v5  ;;  %958 = vmatprep.mubr.msk.bf16.mxu0 %vm1150_vm0, %v1149_v0 }
  0x28   : > { %956 = vmatprep.subr.bf16.mxu0 %v1149_v0 }
  0x2b   : > { %957 = vmatpush3.bf16.msra.mxu0 %v1227_v8 }
  0x2c   : > { %970 = vmatprep.subr.bf16.mxu0 %v1149_v0 }
  0x9c   : > { %v169_v9 = vpop.permute.xlu0 %168 }
  0x9d   : > { %v175_v11 = vmul.f32 %v1242_v10, %v169_v9 }
  0x9f   : > { %v180_v13 = vadd.f32 %v1245_v12, %v175_v11 }
  0xe6   : > { %v219_v14 = vpop.f32.mrf.mxu0 }
  0xe7   : > { %v225_v15 = vadd.f32 %v219_v14, %v180_v13 }
  0xe8   : > { %v944_v16 = vpop.f32.mrf.mxu0 }
  0xe9   : > { %1044 = vtanh.f32 %v225_v15  ;;  %v895_v20 = vmul.f32 -1.442695, %v225_v15 }
  0xea   : > { %v222_v17 = vpop.f32.mrf.mxu0 }
  0xeb   : > { %1046 = vpow2.f32 %v895_v20  ;;  %v1156_v20 = vmov 3  }
  0xec   : > { %v945_v18 = vpop.f32.mrf.mxu0 }
  0xf6   : > { %v1045_v19 = vpop.eup %1044 }
  0xf7   : > { %235 = vrot.lane.b32.xlu0 %v1045_v19, %s1152_s23 }
  0xf8   : > { %v1047_v21 = vpop.eup %1046 }
  0xf9   : > { %v229_v22 = vadd.f32 1.0, %v1047_v21 }
  0xfb   : > { %1048 = vrcp.f32 %v229_v22 }
 0x108   : > { %v1049_v23 = vpop.eup %1048 }
 0x109   : > { %v233_v26 = vmul.f32 0.0, %v1049_v23 }
 0x169   : > { %v236_v24 = vpop.permute.xlu0 %235 }
 0x16a   : > { %v238_v25 = vmul.f32 %v1049_v23, %v236_v24 }
 0x16c   : > { %240 = vrot.lane.b32.xlu1 %v238_v25, %s1153_s24 }
 0x1de   : > { %v241_v27 = vpop.permute.xlu1 %240 }
 0x1df   : > { %v243_v28 = vadd.f32 %v241_v27, %v233_v26 }
 0x1e1   : > { %1050 = vtanh.f32 %v243_v28 }
 0x1ee   : > { %v1051_v29 = vpop.eup %1050 }
 0x1ef   : > { %246 = vrot.lane.b32.xlu1 %v1051_v29, %s1152_s23 }
 0x1f3   : > { %251 = vperm.xlu1 %1037, %v1223_v7  }
 0x261   : > { %v247_v31 = vpop.permute.xlu1 %246 }
 0x262   : > { %v249_v32 = vmul.f32 %v1049_v23, %v247_v31 }
 0x264   : > { %v256_v33 = vpack.c.bf16 %v249_v32, %v249_v32 }
 0x266   : > { %258 = vrot.lane.b32.xlu0 %v256_v33, %s1153_s24 }
 0x26e   : > { %v252_v35 = vpop.permute.xlu1 %251 }
 0x26f   : > { %v254_v36 = vmul.f32 %v1242_v10, %v252_v35 }
 0x271   : > { %v255_v37 = vadd.f32 %v1245_v12, %v254_v36 }
 0x2d8   : > { %v259_v34 = vpop.permute.xlu0 %258 }
 0x2d9   : > { %951 = vmatmul.mubr.msk.bf16.vlgmr.msra.gmra.mxu1 %vm181_vm1, %v259_v34 }
 0x2da   : > { %963 = vmatpush3.bf16.msra.mxu1 %v1221_v5  ;;  %966 = vmatprep.mubr.msk.bf16.mxu1 %vm1150_vm0, %v1149_v0 }
 0x2db   : > { %964 = vmatprep.subr.bf16.mxu1 %v1149_v0 }
 0x2de   : > { %965 = vmatpush3.bf16.msra.mxu1 %v1227_v8 }
 0x2df   : > { %978 = vmatprep.subr.bf16.mxu1 %v1149_v0 }
 0x399   : > { %v297_v38 = vpop.f32.mrf.mxu1 }
 0x39a   : > { %v303_v39 = vadd.f32 %v297_v38, %v255_v37 }
 0x39b   : > { %v952_v40 = vpop.f32.mrf.mxu1 }
 0x39c   : > { %1052 = vtanh.f32 %v303_v39  ;;  %v897_v44 = vmul.f32 -1.442695, %v303_v39 }
 0x39d   : > { %v300_v41 = vpop.f32.mrf.mxu1 }
 0x39e   : > { %1054 = vpow2.f32 %v897_v44  ;;  %v1157_v44 = vmov 4  }
 0x39f   : > { %v953_v42 = vpop.f32.mrf.mxu1 }
 0x3a9   : > { %v1053_v43 = vpop.eup %1052 }
 0x3aa   : > { %313 = vrot.lane.b32.xlu0 %v1053_v43, %s1152_s23 }
 0x3ab   : > { %v1055_v45 = vpop.eup %1054 }
 0x3ac   : > { %v307_v46 = vadd.f32 1.0, %v1055_v45 }
 0x3ae   : > { %1056 = vrcp.f32 %v307_v46 }
 0x3bb   : > { %v1057_v47 = vpop.eup %1056 }
 0x3bc   : > { %v311_v50 = vmul.f32 %v1057_v47, %v243_v28 }
 0x41c   : > { %v314_v48 = vpop.permute.xlu0 %313 }
 0x41d   : > { %v316_v49 = vmul.f32 %v1057_v47, %v314_v48 }
 0x41f   : > { %318 = vrot.lane.b32.xlu1 %v316_v49, %s1153_s24 }
 0x491   : > { %v319_v51 = vpop.permute.xlu1 %318 }
 0x492   : > { %v321_v52 = vadd.f32 %v319_v51, %v311_v50 }
 0x494   : > { %1058 = vtanh.f32 %v321_v52 }
 0x4a1   : > { %v1059_v53 = vpop.eup %1058 }
 0x4a2   : > { %324 = vrot.lane.b32.xlu0 %v1059_v53, %s1152_s23 }
 0x4a6   : > { %329 = vperm.xlu0 %1038, %v1223_v7  }
 0x4aa   : > { %1039 = vset.pattern.permute.xlu0 %v1156_v20 }
 0x514   : > { %v325_v55 = vpop.permute.xlu0 %324 }
 0x515   : > { %v327_v56 = vmul.f32 %v1057_v47, %v325_v55 }
 0x517   : > { %v334_v57 = vpack.c.bf16 %v327_v56, %v327_v56 }
 0x519   : > { %336 = vrot.lane.b32.xlu1 %v334_v57, %s1153_s24 }
 0x521   : > { %v330_v59 = vpop.permute.xlu0 %329 }
 0x522   : > { %v332_v60 = vmul.f32 %v1242_v10, %v330_v59 }
 0x524   : > { %v333_v61 = vadd.f32 %v1245_v12, %v332_v60 }
 0x58b   : > { %v337_v58 = vpop.permute.xlu1 %336 }
 0x58c   : > { %959 = vmatmul.mubr.msk.bf16.vlgmr.msra.gmra.mxu0 %vm181_vm1, %v337_v58 }
 0x58d   : > { %971 = vmatpush3.bf16.msra.mxu0 %v1221_v5  ;;  %974 = vmatprep.mubr.msk.bf16.mxu0 %vm1150_vm0, %v1149_v0 }
 0x58e   : > { %972 = vmatprep.subr.bf16.mxu0 %v1149_v0 }
 0x591   : > { %973 = vmatpush3.bf16.msra.mxu0 %v1227_v8 }
 0x592   : > { %986 = vmatprep.subr.bf16.mxu0 %v1149_v0 }
 0x64c   : > { %v375_v62 = vpop.f32.mrf.mxu0 }
 0x64d   : > { %v381_v63 = vadd.f32 %v375_v62, %v333_v61 }
 0x64e   : > { %v960_v1 = vpop.f32.mrf.mxu0 }
 0x64f   : > { %1060 = vtanh.f32 %v381_v63  ;;  %v899_v6 = vmul.f32 -1.442695, %v381_v63 }
 0x650   : > { %v378_v2 = vpop.f32.mrf.mxu0 }
 0x651   : > { %1062 = vpow2.f32 %v899_v6  ;;  %v1158_v6 = vmov 5  }
 0x652   : > { %v961_v3 = vpop.f32.mrf.mxu0 }
 0x65c   : > { %v1061_v4 = vpop.eup %1060 }
 0x65d   : > { %391 = vrot.lane.b32.xlu1 %v1061_v4, %s1152_s23 }
 0x65e   : > { %v1063_v9 = vpop.eup %1062 }
 0x65f   : > { %v385_v11 = vadd.f32 1.0, %v1063_v9 }
 0x661   : > { %1064 = vrcp.f32 %v385_v11 }
 0x66e   : > { %v1065_v13 = vpop.eup %1064 }
 0x66f   : > { %v389_v16 = vmul.f32 %v1065_v13, %v321_v52 }
 0x6cf   : > { %v392_v14 = vpop.permute.xlu1 %391 }
 0x6d0   : > { %v394_v15 = vmul.f32 %v1065_v13, %v392_v14 }
 0x6d2   : > { %396 = vrot.lane.b32.xlu1 %v394_v15, %s1153_s24 }
 0x744   : > { %v397_v17 = vpop.permute.xlu1 %396 }
 0x745   : > { %v399_v18 = vadd.f32 %v397_v17, %v389_v16 }
 0x747   : > { %1066 = vtanh.f32 %v399_v18 }
 0x754   : > { %v1067_v19 = vpop.eup %1066 }
 0x755   : > { %402 = vrot.lane.b32.xlu0 %v1067_v19, %s1152_s23 }
 0x759   : > { %407 = vperm.xlu0 %1039, %v1223_v7  }
 0x75d   : > { %1040 = vset.pattern.permute.xlu0 %v1157_v44 }
 0x7c7   : > { %v403_v21 = vpop.permute.xlu0 %402 }
 0x7c8   : > { %v405_v22 = vmul.f32 %v1065_v13, %v403_v21 }
 0x7ca   : > { %v412_v23 = vpack.c.bf16 %v405_v22, %v405_v22 }
 0x7cc   : > { %414 = vrot.lane.b32.xlu1 %v412_v23, %s1153_s24 }
 0x7d4   : > { %v408_v25 = vpop.permute.xlu0 %407 }
 0x7d5   : > { %v410_v26 = vmul.f32 %v1242_v10, %v408_v25 }
 0x7d7   : > { %v411_v27 = vadd.f32 %v1245_v12, %v410_v26 }
 0x83e   : > { %v415_v24 = vpop.permute.xlu1 %414 }
 0x83f   : > { %967 = vmatmul.mubr.msk.bf16.vlgmr.msra.gmra.mxu1 %vm181_vm1, %v415_v24 }
 0x840   : > { %979 = vmatpush3.bf16.msra.mxu1 %v1221_v5  ;;  %982 = vmatprep.mubr.msk.bf16.mxu1 %vm1150_vm0, %v1149_v0 }
 0x841   : > { %980 = vmatprep.subr.bf16.mxu1 %v1149_v0 }
 0x844   : > { %981 = vmatpush3.bf16.msra.mxu1 %v1227_v8 }
 0x845   : > { %994 = vmatprep.subr.bf16.mxu1 %v1149_v0 }
 0x8ff   : > { %v453_v28 = vpop.f32.mrf.mxu1 }
 0x900   : > { %v459_v29 = vadd.f32 %v453_v28, %v411_v27 }
 0x901   : > { %v968_v30 = vpop.f32.mrf.mxu1 }
 0x902   : > { %1068 = vtanh.f32 %v459_v29  ;;  %v901_v34 = vmul.f32 -1.442695, %v459_v29 }
 0x903   : > { %v456_v31 = vpop.f32.mrf.mxu1 }
 0x904   : > { %1070 = vpow2.f32 %v901_v34  ;;  %v1159_v31 = vmov 6  }
 0x905   : > { %v969_v32 = vpop.f32.mrf.mxu1 }
 0x90f   : > { %v1069_v33 = vpop.eup %1068 }
 0x910   : > { %469 = vrot.lane.b32.xlu1 %v1069_v33, %s1152_s23 }
 0x911   : > { %v1071_v35 = vpop.eup %1070 }
 0x912   : > { %v463_v36 = vadd.f32 1.0, %v1071_v35 }
 0x914   : > { %1072 = vrcp.f32 %v463_v36 }
 0x921   : > { %v1073_v37 = vpop.eup %1072 }
 0x922   : > { %v467_v40 = vmul.f32 %v1073_v37, %v399_v18 }
 0x982   : > { %v470_v38 = vpop.permute.xlu1 %469 }
 0x983   : > { %v472_v39 = vmul.f32 %v1073_v37, %v470_v38 }
 0x985   : > { %474 = vrot.lane.b32.xlu1 %v472_v39, %s1153_s24 }
 0x9f7   : > { %v475_v41 = vpop.permute.xlu1 %474 }
 0x9f8   : > { %v477_v42 = vadd.f32 %v475_v41, %v467_v40 }
 0x9fa   : > { %1074 = vtanh.f32 %v477_v42 }
 0xa07   : > { %v1075_v43 = vpop.eup %1074 }
 0xa08   : > { %480 = vrot.lane.b32.xlu0 %v1075_v43, %s1152_s23 }
 0xa0c   : > { %485 = vperm.xlu0 %1040, %v1223_v7  }
 0xa10   : > { %1041 = vset.pattern.permute.xlu0 %v1158_v6 }
 0xa7a   : > { %v481_v45 = vpop.permute.xlu0 %480 }
 0xa7b   : > { %v483_v46 = vmul.f32 %v1073_v37, %v481_v45 }
 0xa7d   : > { %v490_v47 = vpack.c.bf16 %v483_v46, %v483_v46 }
 0xa7f   : > { %492 = vrot.lane.b32.xlu1 %v490_v47, %s1153_s24 }
 0xa87   : > { %v486_v49 = vpop.permute.xlu0 %485 }
 0xa88   : > { %v488_v50 = vmul.f32 %v1242_v10, %v486_v49 }
 0xa8a   : > { %v489_v51 = vadd.f32 %v1245_v12, %v488_v50 }
 0xaf1   : > { %v493_v48 = vpop.permute.xlu1 %492 }
 0xaf2   : > { %975 = vmatmul.mubr.msk.bf16.vlgmr.msra.gmra.mxu0 %vm181_vm1, %v493_v48 }
 0xaf3   : > { %987 = vmatpush3.bf16.msra.mxu0 %v1221_v5  ;;  %990 = vmatprep.mubr.msk.bf16.mxu0 %vm1150_vm0, %v1149_v0 }
 0xaf4   : > { %988 = vmatprep.subr.bf16.mxu0 %v1149_v0 }
 0xaf7   : > { %989 = vmatpush3.bf16.msra.mxu0 %v1227_v8 }
 0xbb2   : > { %v531_v52 = vpop.f32.mrf.mxu0 }
 0xbb3   : > { %v537_v53 = vadd.f32 %v531_v52, %v489_v51 }
 0xbb4   : > { %v976_v54 = vpop.f32.mrf.mxu0 }
 0xbb5   : > { %1076 = vtanh.f32 %v537_v53  ;;  %v903_v58 = vmul.f32 -1.442695, %v537_v53 }
 0xbb6   : > { %v534_v55 = vpop.f32.mrf.mxu0 }
 0xbb7   : > { %1078 = vpow2.f32 %v903_v58  ;;  %v1160_v55 = vmov 7  }
 0xbb8   : > { %v977_v56 = vpop.f32.mrf.mxu0 }
 0xbc2   : > { %v1077_v57 = vpop.eup %1076 }
 0xbc3   : > { %547 = vrot.lane.b32.xlu1 %v1077_v57, %s1152_s23 }
 0xbc4   : > { %v1079_v59 = vpop.eup %1078 }
 0xbc5   : > { %v541_v60 = vadd.f32 1.0, %v1079_v59 }
 0xbc7   : > { %1080 = vrcp.f32 %v541_v60 }
 0xbd4   : > { %v1081_v61 = vpop.eup %1080 }
 0xbd5   : > { %v545_v1 = vmul.f32 %v1081_v61, %v477_v42 }
 0xc35   : > { %v548_v62 = vpop.permute.xlu1 %547 }
 0xc36   : > { %v550_v63 = vmul.f32 %v1081_v61, %v548_v62 }
 0xc38   : > { %552 = vrot.lane.b32.xlu1 %v550_v63, %s1153_s24 }
 0xcaa   : > { %v553_v2 = vpop.permute.xlu1 %552 }
 0xcab   : > { %v555_v3 = vadd.f32 %v553_v2, %v545_v1 }
 0xcad   : > { %1082 = vtanh.f32 %v555_v3 }
 0xcba   : > { %v1083_v4 = vpop.eup %1082 }
 0xcbb   : > { %558 = vrot.lane.b32.xlu0 %v1083_v4, %s1152_s23 }
 0xcbf   : > { %563 = vperm.xlu0 %1041, %v1223_v7  }
 0xcc3   : > { %1042 = vset.pattern.permute.xlu0 %v1159_v31 }
 0xd2d   : > { %v559_v9 = vpop.permute.xlu0 %558 }
 0xd2e   : > { %v561_v11 = vmul.f32 %v1081_v61, %v559_v9 }
 0xd30   : > { %v568_v13 = vpack.c.bf16 %v561_v11, %v561_v11 }
 0xd32   : > { %570 = vrot.lane.b32.xlu1 %v568_v13, %s1153_s24 }
 0xd3a   : > { %v564_v15 = vpop.permute.xlu0 %563 }
 0xd3b   : > { %v566_v16 = vmul.f32 %v1242_v10, %v564_v15 }
 0xd3d   : > { %v567_v17 = vadd.f32 %v1245_v12, %v566_v16 }
 0xda4   : > { %v571_v14 = vpop.permute.xlu1 %570 }
 0xda5   : > { %983 = vmatmul.mubr.msk.bf16.vlgmr.msra.gmra.mxu1 %vm181_vm1, %v571_v14 }
 0xda6   : > { %995 = vmatpush3.bf16.msra.mxu1 %v1221_v5  ;;  %998 = vmatprep.mubr.msk.bf16.mxu1 %vm1150_vm0, %v1149_v0 }
 0xda7   : > { %996 = vmatprep.subr.bf16.mxu1 %v1149_v0 }
 0xdaa   : > { %997 = vmatpush3.bf16.msra.mxu1 %v1227_v8 }
 0xe65   : > { %v609_v18 = vpop.f32.mrf.mxu1 }
 0xe66   : > { %v615_v19 = vadd.f32 %v609_v18, %v567_v17 }
 0xe67   : > { %v984_v20 = vpop.f32.mrf.mxu1 }
 0xe68   : > { %1084 = vtanh.f32 %v615_v19  ;;  %v905_v5 = vmul.f32 -1.442695, %v615_v19 }
 0xe69   : > { %v612_v21 = vpop.f32.mrf.mxu1 }
 0xe6a   : > { %1086 = vpow2.f32 %v905_v5 }
 0xe6b   : > { %v985_v22 = vpop.f32.mrf.mxu1 }
 0xe75   : > { %v1085_v23 = vpop.eup %1084 }
 0xe76   : > { %625 = vrot.lane.b32.xlu1 %v1085_v23, %s1152_s23 }
 0xe77   : > { %v1087_v24 = vpop.eup %1086 }
 0xe78   : > { %v619_v0 = vadd.f32 1.0, %v1087_v24  ;;  %v911_v24 = vld [vmem:[#allocation2 + $0x3] ss:$0 sm:$0xff] }
 0xe7a   : > { %1088 = vrcp.f32 %v619_v0 }
 0xe87   : > { %v1089_v8 = vpop.eup %1088 }
 0xe88   : > { %v623_v27 = vmul.f32 %v1089_v8, %v555_v3 }
 0xee8   : > { %v626_v25 = vpop.permute.xlu1 %625 }
 0xee9   : > { %v628_v26 = vmul.f32 %v1089_v8, %v626_v25 }
 0xeeb   : > { %630 = vrot.lane.b32.xlu1 %v628_v26, %s1153_s24 }
 0xf5d   : > { %v631_v28 = vpop.permute.xlu1 %630 }
 0xf5e   : > { %v633_v29 = vadd.f32 %v631_v28, %v623_v27 }
 0xf60   : > { %1090 = vtanh.f32 %v633_v29 }
 0xf6d   : > { %v1091_v30 = vpop.eup %1090 }
 0xf6e   : > { %636 = vrot.lane.b32.xlu0 %v1091_v30, %s1152_s23 }
 0xf72   : > { %641 = vperm.xlu0 %1042, %v1223_v7  }
 0xf76   : > { %1043 = vset.pattern.permute.xlu0 %v1160_v55 }
 0xfe0   : > { %v637_v32 = vpop.permute.xlu0 %636 }
 0xfe1   : > { %v639_v33 = vmul.f32 %v1089_v8, %v637_v32 }
 0xfe3   : > { %v646_v34 = vpack.c.bf16 %v639_v33, %v639_v33 }
 0xfe5   : > { %648 = vrot.lane.b32.xlu1 %v646_v34, %s1153_s24 }
 0xfed   : > { %v642_v36 = vpop.permute.xlu0 %641 }
 0xfee   : > { %v644_v37 = vmul.f32 %v1242_v10, %v642_v36 }
 0xff0   : > { %v645_v38 = vadd.f32 %v1245_v12, %v644_v37 }
0x1057   : > { %v649_v35 = vpop.permute.xlu1 %648 }
0x1058   : > { %991 = vmatmul.mubr.msk.bf16.vlgmr.msra.gmra.mxu0 %vm181_vm1, %v649_v35 }
0x1118   : > { %v687_v39 = vpop.f32.mrf.mxu0 }
0x1119   : > { %v693_v40 = vadd.f32 %v687_v39, %v645_v38 }
0x111a   : > { %v992_v41 = vpop.f32.mrf.mxu0 }
0x111b   : > { %1092 = vtanh.f32 %v693_v40  ;;  %v907_v45 = vmul.f32 -1.442695, %v693_v40 }
0x111c   : > { %v690_v42 = vpop.f32.mrf.mxu0 }
0x111d   : > { %1094 = vpow2.f32 %v907_v45 }
0x111e   : > { %v993_v43 = vpop.f32.mrf.mxu0 }
0x1128   : > { %v1093_v44 = vpop.eup %1092 }
0x1129   : > { %703 = vrot.lane.b32.xlu1 %v1093_v44, %s1152_s23 }
0x112a   : > { %v1095_v46 = vpop.eup %1094 }
0x112b   : > { %v697_v47 = vadd.f32 1.0, %v1095_v46 }
0x112d   : > { %1096 = vrcp.f32 %v697_v47 }
0x113a   : > { %v1097_v48 = vpop.eup %1096 }
0x113b   : > { %v701_v51 = vmul.f32 %v1097_v48, %v633_v29 }
0x119b   : > { %v704_v49 = vpop.permute.xlu1 %703 }
0x119c   : > { %v706_v50 = vmul.f32 %v1097_v48, %v704_v49 }
0x119e   : > { %708 = vrot.lane.b32.xlu1 %v706_v50, %s1153_s24 }
0x1210   : > { %v709_v52 = vpop.permute.xlu1 %708 }
0x1211   : > { %v711_v53 = vadd.f32 %v709_v52, %v701_v51 }
0x1213   : > { %1098 = vtanh.f32 %v711_v53 }
0x1220   : > { %v1099_v54 = vpop.eup %1098 }
0x1221   : > { %714 = vrot.lane.b32.xlu0 %v1099_v54, %s1152_s23 }
0x1225   : > { %719 = vperm.xlu0 %1043, %v1223_v7  }
0x1293   : > { %v715_v56 = vpop.permute.xlu0 %714 }
0x1294   : > { %v717_v57 = vmul.f32 %v1097_v48, %v715_v56 }
0x1296   : > { %v724_v58 = vpack.c.bf16 %v717_v57, %v717_v57 }
0x1298   : > { %726 = vrot.lane.b32.xlu1 %v724_v58, %s1153_s24 }
0x12a0   : > { %v720_v60 = vpop.permute.xlu0 %719 }
0x12a1   : > { %v722_v61 = vmul.f32 %v1242_v10, %v720_v60  ;;  %v910_v10 = vld [vmem:[#allocation2 + $0x2] ss:$0 sm:$0xff] }
0x12a3   : > { %v723_v62 = vadd.f32 %v1245_v12, %v722_v61 }
0x130a   : > { %v727_v59 = vpop.permute.xlu1 %726 }
0x130b   : > { %999 = vmatmul.mubr.msk.bf16.vlgmr.msra.gmra.mxu1 %vm181_vm1, %v727_v59 }
0x13cb   : > { %v765_v63 = vpop.f32.mrf.mxu1 }
0x13cc   : > { %v771_v1 = vadd.f32 %v765_v63, %v723_v62 }
0x13cd   : > { %v1000_v2 = vpop.f32.mrf.mxu1 }
0x13ce   : > { %1100 = vtanh.f32 %v771_v1  ;;  %v909_v6 = vmul.f32 -1.442695, %v771_v1 }
0x13cf   : > { %v768_v3 = vpop.f32.mrf.mxu1 }
0x13d0   : > { %1102 = vpow2.f32 %v909_v6 }
0x13d1   : > { %v1001_v4 = vpop.f32.mrf.mxu1 }
0x13db   : > { %v1101_v7 = vpop.eup %1100 }
0x13dc   : > { %781 = vrot.lane.b32.xlu1 %v1101_v7, %s1152_s23 }
0x13dd   : > { %v1103_v9 = vpop.eup %1102 }
0x13de   : > { %v775_v11 = vadd.f32 1.0, %v1103_v9 }
0x13e0   : > { %1104 = vrcp.f32 %v775_v11 }
0x13ed   : > { %v1105_v13 = vpop.eup %1104 }
0x13ee   : > { %v779_v12 = vmul.f32 %v1105_v13, %v711_v53 }
0x144e   : > { %v782_v14 = vpop.permute.xlu1 %781 }
0x144f   : > { %v784_v15 = vmul.f32 %v1105_v13, %v782_v14 }
0x1451   : > { %786 = vrot.lane.b32.xlu1 %v784_v15, %s1153_s24 }
0x1455   : > { %801 = vrot.lane.b32.xlu1 %v910_v10, %s1161_s25 }
0x14c3   : > { %v787_v16 = vpop.permute.xlu1 %786 }
0x14c4   : > { %v789_v17 = vadd.f32 %v787_v16, %v779_v12 }
0x14c6   : > { %1106 = vtanh.f32 %v789_v17 }
0x14c7   : > { %v802_v20 = vpop.permute.xlu1 %801 }
0x14d3   : > { %v1107_v18 = vpop.eup %1106 }
0x14d4   : > { %792 = vrot.lane.b32.xlu0 %v1107_v18, %s1152_s23 }
0x1546   : > { %v793_v19 = vpop.permute.xlu0 %792 }
0x1547   : > { %v795_v21 = vmul.f32 %v1105_v13, %v793_v19 }
0x1549   : > { %v804_v22 = vmul.f32 %v802_v20, %v795_v21 }
0x154b   : > { %806 = vrot.lane.b32.xlu0 %v804_v22, %s1153_s24 }
0x15bd   : > { %v807_v23 = vpop.permute.xlu0 %806 }
0x15be   : > { %v809_v5 = vsel %vm181_vm1, %v807_v23, 0.0 }
0x15bf   : > { %810 = vadd.xlane.f32.xlu1 %v809_v5 }
0x1648   : > { %v811_v0 = vpop.xlane.xlu1 %810 }
0x1649   : > { %v816_v8 = vadd.f32 %v911_v24, %v811_v0 }
0x164b   : > { %818 = vst.msk [vmem:[%s153_s28] sm:$0xff] %vm817_vm2, %v816_v8 }
0x164c PF: > { %s13_s9 = sadd.s32 1, %s1144_s9  }
0x164d   : > { %p10_p1 = scmp.ge.s32.totalorder %s13_s9, 4  }
0x164f   :  { %12 = sbr.rel (!%p10_p1) target bundleno = 1 (0x1), region = 63 }
0x1654   :  { %838 = vsyncpa [#allocation3], 1 }
0x1655   :  { %840 = vsyncpa [#allocation3 + $0x1], 1 }

</bundles_post_ra>
